<compile_context>
chip_gen: v7x
topology: tpu7x:2x2x1
jax: 0.10.0
libtpu: 0.0.40
codegen_flags: <defaults>
</compile_context>

<pallas_src>
import jax
import jax.numpy as jnp
from jax.experimental import pallas as pl
from jax.experimental.pallas import tpu as pltpu

HIDDEN1_UNITS = 300
HIDDEN2_UNITS = 600

HIDDEN1_PAD = 384   # 300 padded to 3 * 128 lanes
HIDDEN2_PAD = 640   # 600 padded to 5 * 128 lanes
OUT_PAD = 128       # 3 head columns padded to one lane-dense 128-wide slab
NUM_HEADS = 3       # steering, acceleration, brake


def _round_up(x, m):
    return ((x + m - 1) // m) * m


def _actor_kernel(x_ref, w1_ref, b1_ref, w2_ref, b2_ref, wh_ref, bh_ref, out_ref):
    x = x_ref[...]                                            # (TB, S) f32

    # fc1 + relu  (bf16 MXU inputs, f32 accumulate, f32 VPU math)
    h1 = jnp.dot(x.astype(jnp.bfloat16), w1_ref[...],
                 preferred_element_type=jnp.float32) + b1_ref[...]
    h1 = jnp.maximum(h1, 0.0)                                 # (TB, 384)

    # fc2 + relu
    h2 = jnp.dot(h1.astype(jnp.bfloat16), w2_ref[...],
                 preferred_element_type=jnp.float32) + b2_ref[...]
    h2 = jnp.maximum(h2, 0.0)                                 # (TB, 640)

    # Fused heads: [steering | acceleration | brake | zero-pad] in one matmul.
    heads = jnp.dot(h2.astype(jnp.bfloat16), wh_ref[...],
                    preferred_element_type=jnp.float32) + bh_ref[...]   # (TB, 128)

    col = jax.lax.broadcasted_iota(jnp.int32, heads.shape, 1)
    sig = 1.0 / (1.0 + jnp.exp(-heads))                       # EUP exp + VPU
    # col 0 -> tanh(steering); cols 1,2 -> sigmoid; cols >= 3 are padding
    # (sliced off in the wrapper).
    out_ref[...] = jnp.where(col == 0, jnp.tanh(heads), sig)


def actor_forward(x, params, *, block_b=128):
    """ActorNetwork forward in one Pallas call.

    x: (B, state_size) float32
    params: dict with lane-aligned bf16 weights / f32 biases (see init_params).
    Returns (B, 3) float32: [tanh(steering), sigmoid(accel), sigmoid(brake)].
    """
    B, S = x.shape
    TB = min(block_b, _round_up(B, 8))
    B_pad = _round_up(B, TB)
    if B_pad != B:
        x = jnp.pad(x, ((0, B_pad - B), (0, 0)))

    grid = (pl.cdiv(B_pad, TB),)

    def const2d(arr):
        # Full-array block + constant index_map -> the block index never
        # changes, so the tile stays resident in VMEM across all grid steps.
        return pl.BlockSpec(arr.shape, lambda i: (0, 0))

    in_specs = [
        pl.BlockSpec((TB, S), lambda i: (i, 0)),   # batch-tiled activations
        const2d(params["w1"]), const2d(params["b1"]),
        const2d(params["w2"]), const2d(params["b2"]),
        const2d(params["wh"]), const2d(params["bh"]),
    ]
    out_spec = pl.BlockSpec((TB, OUT_PAD), lambda i: (i, 0))

    out_padded = pl.pallas_call(
        _actor_kernel,
        out_shape=jax.ShapeDtypeStruct((B_pad, OUT_PAD), jnp.float32),
        grid=grid,
        in_specs=in_specs,
        out_specs=out_spec,
        compiler_params=pltpu.CompilerParams(
            dimension_semantics=("parallel",)),
    )(x, params["w1"], params["b1"], params["w2"], params["b2"],
      params["wh"], params["bh"])

    return out_padded[:B, :NUM_HEADS]


def init_params(key, state_size):
    """Deterministic synthetic parameters mirroring the PyTorch init.

    fc1/fc2: torch.nn.Linear default U(-1/sqrt(fan_in), 1/sqrt(fan_in)).
    Head weights: Normal(0, 0.0001); head biases: torch default uniform.
    Stored kernel-ready: weights (in, out) bf16, lane-padded; biases (1, out) f32.
    """
    keys = jax.random.split(key, 10)

    def uniform_linear(kw, kb, fan_in, fan_out):
        bound = 1.0 / jnp.sqrt(fan_in)
        w = jax.random.uniform(kw, (fan_in, fan_out), jnp.float32, -bound, bound)
        b = jax.random.uniform(kb, (fan_out,), jnp.float32, -bound, bound)
        return w, b

    w1, b1 = uniform_linear(keys[0], keys[1], state_size, HIDDEN1_UNITS)
    w2, b2 = uniform_linear(keys[2], keys[3], HIDDEN1_UNITS, HIDDEN2_UNITS)

    hbound = 1.0 / jnp.sqrt(HIDDEN2_UNITS)
    w_st = 1e-4 * jax.random.normal(keys[4], (HIDDEN2_UNITS, 1), jnp.float32)
    b_st = jax.random.uniform(keys[5], (1,), jnp.float32, -hbound, hbound)
    w_ac = 1e-4 * jax.random.normal(keys[6], (HIDDEN2_UNITS, 1), jnp.float32)
    b_ac = jax.random.uniform(keys[7], (1,), jnp.float32, -hbound, hbound)
    w_br = 1e-4 * jax.random.normal(keys[8], (HIDDEN2_UNITS, 1), jnp.float32)
    b_br = jax.random.uniform(keys[9], (1,), jnp.float32, -hbound, hbound)

    # Lane-aligned, zero-padded packing (padding contributes exactly 0).
    w1_p = jnp.zeros((state_size, HIDDEN1_PAD), jnp.float32)
    w1_p = w1_p.at[:, :HIDDEN1_UNITS].set(w1)
    b1_p = jnp.zeros((1, HIDDEN1_PAD), jnp.float32).at[:, :HIDDEN1_UNITS].set(b1)

    w2_p = jnp.zeros((HIDDEN1_PAD, HIDDEN2_PAD), jnp.float32)
    w2_p = w2_p.at[:HIDDEN1_UNITS, :HIDDEN2_UNITS].set(w2)
    b2_p = jnp.zeros((1, HIDDEN2_PAD), jnp.float32).at[:, :HIDDEN2_UNITS].set(b2)

    wh = jnp.concatenate([w_st, w_ac, w_br], axis=1)            # (600, 3)
    bh = jnp.concatenate([b_st, b_ac, b_br], axis=0)            # (3,)
    wh_p = jnp.zeros((HIDDEN2_PAD, OUT_PAD), jnp.float32)
    wh_p = wh_p.at[:HIDDEN2_UNITS, :NUM_HEADS].set(wh)
    bh_p = jnp.zeros((1, OUT_PAD), jnp.float32).at[:, :NUM_HEADS].set(bh)

    return {
        "w1": w1_p.astype(jnp.bfloat16), "b1": b1_p,
        "w2": w2_p.astype(jnp.bfloat16), "b2": b2_p,
        "wh": wh_p.astype(jnp.bfloat16), "bh": bh_p,
    }


def actor_reference(x, p):
    """Pure-JAX reference mirroring the PyTorch forward (same bf16 weights)."""
    def mm(act, w):
        return jnp.dot(act.astype(jnp.bfloat16), w,
                       preferred_element_type=jnp.float32)

    h1 = jnp.maximum(mm(x, p["w1"]) + p["b1"], 0.0)
    h2 = jnp.maximum(mm(h1, p["w2"]) + p["b2"], 0.0)
    heads = mm(h2, p["wh"]) + p["bh"]
    out1 = jnp.tanh(heads[:, 0:1])
    out2 = 1.0 / (1.0 + jnp.exp(-heads[:, 1:2]))
    out3 = 1.0 / (1.0 + jnp.exp(-heads[:, 2:3]))
    return jnp.concatenate([out1, out2, out3], axis=1)


if __name__ == "__main__":
    key = jax.random.PRNGKey(0)
    k_x, k_p = jax.random.split(key)

    batch = 16
    state_size = 32

    x = jax.random.normal(k_x, (batch, state_size), jnp.float32)
    params = init_params(k_p, state_size)

    # block_b=8 -> grid=(2,) to exercise the batch grid with resident weights.
    out = actor_forward(x, params, block_b=8)
    out = jax.block_until_ready(out)

    ref = actor_reference(x, params)
    assert out.shape == (batch, NUM_HEADS)
    max_err = float(jnp.max(jnp.abs(out - ref)))
    assert jnp.allclose(out, ref, atol=1e-4, rtol=1e-4), max_err

    print("KERNEL_OK")
</pallas_src>

<mosaic_0001>
module attributes {stable_mosaic.version = 11 : i64} {
  func.func @_actor_kernel(%arg0: i32, %arg1: memref<8x32xf32, #tpu.memory_space<vmem>>, %arg2: memref<32x384xbf16, #tpu.memory_space<vmem>>, %arg3: memref<1x384xf32, #tpu.memory_space<vmem>>, %arg4: memref<384x640xbf16, #tpu.memory_space<vmem>>, %arg5: memref<1x640xf32, #tpu.memory_space<vmem>>, %arg6: memref<640x128xbf16, #tpu.memory_space<vmem>>, %arg7: memref<1x128xf32, #tpu.memory_space<vmem>>, %arg8: memref<8x128xf32, #tpu.memory_space<vmem>>) attributes {dimension_semantics = [#tpu.dimension_semantics<parallel>], iteration_bounds = array<i64: 2>, scalar_prefetch = 0 : i64, scratch_operands = 0 : i64, tpu.core_type = #tpu.core_type<tc>, window_params = [{transform_indices = @transform_0, window_bounds = array<i64: 8, 32>}, {pipeline_mode = #tpu.pipeline_mode<synchronous>, transform_indices = @transform_1, window_bounds = array<i64: 32, 384>}, {pipeline_mode = #tpu.pipeline_mode<synchronous>, transform_indices = @transform_2, window_bounds = array<i64: 1, 384>}, {pipeline_mode = #tpu.pipeline_mode<synchronous>, transform_indices = @transform_3, window_bounds = array<i64: 384, 640>}, {pipeline_mode = #tpu.pipeline_mode<synchronous>, transform_indices = @transform_4, window_bounds = array<i64: 1, 640>}, {pipeline_mode = #tpu.pipeline_mode<synchronous>, transform_indices = @transform_5, window_bounds = array<i64: 640, 128>}, {pipeline_mode = #tpu.pipeline_mode<synchronous>, transform_indices = @transform_6, window_bounds = array<i64: 1, 128>}, {transform_indices = @transform_7, window_bounds = array<i64: 8, 128>}]} {
    %c0 = arith.constant 0 : index
    %c0_0 = arith.constant 0 : index
    %0 = vector.load %arg1[%c0, %c0_0] : memref<8x32xf32, #tpu.memory_space<vmem>>, vector<8x32xf32>
    %1 = arith.truncf %0 : vector<8x32xf32> to vector<8x32xbf16>
    %c0_1 = arith.constant 0 : index
    %c0_2 = arith.constant 0 : index
    %2 = vector.load %arg2[%c0_1, %c0_2] : memref<32x384xbf16, #tpu.memory_space<vmem>>, vector<32x384xbf16>
    %cst = arith.constant dense<0.000000e+00> : vector<8x384xf32>
    %3 = tpu.matmul %1, %2, %cst {dimension_numbers = #tpu.dot_dimension_numbers<[1], [0], [0], [1], [0, 0, 1, 1], [], []>} : vector<8x32xbf16>, vector<32x384xbf16>, vector<8x384xf32> -> vector<8x384xf32>
    %c0_3 = arith.constant 0 : index
    %c0_4 = arith.constant 0 : index
    %4 = vector.load %arg3[%c0_3, %c0_4] : memref<1x384xf32, #tpu.memory_space<vmem>>, vector<1x384xf32>
    %5 = vector.broadcast %4 : vector<1x384xf32> to vector<8x384xf32>
    %6 = arith.addf %3, %5 : vector<8x384xf32>
    %cst_5 = arith.constant 0.000000e+00 : f32
    %7 = vector.broadcast %cst_5 : f32 to vector<8x384xf32>
    %8 = arith.maximumf %6, %7 : vector<8x384xf32>
    %9 = arith.truncf %8 : vector<8x384xf32> to vector<8x384xbf16>
    %c0_6 = arith.constant 0 : index
    %c0_7 = arith.constant 0 : index
    %10 = vector.load %arg4[%c0_6, %c0_7] : memref<384x640xbf16, #tpu.memory_space<vmem>>, vector<384x640xbf16>
    %cst_8 = arith.constant dense<0.000000e+00> : vector<8x640xf32>
    %11 = tpu.matmul %9, %10, %cst_8 {dimension_numbers = #tpu.dot_dimension_numbers<[1], [0], [0], [1], [0, 0, 1, 1], [], []>} : vector<8x384xbf16>, vector<384x640xbf16>, vector<8x640xf32> -> vector<8x640xf32>
    %c0_9 = arith.constant 0 : index
    %c0_10 = arith.constant 0 : index
    %12 = vector.load %arg5[%c0_9, %c0_10] : memref<1x640xf32, #tpu.memory_space<vmem>>, vector<1x640xf32>
    %13 = vector.broadcast %12 : vector<1x640xf32> to vector<8x640xf32>
    %14 = arith.addf %11, %13 : vector<8x640xf32>
    %cst_11 = arith.constant 0.000000e+00 : f32
    %15 = vector.broadcast %cst_11 : f32 to vector<8x640xf32>
    %16 = arith.maximumf %14, %15 : vector<8x640xf32>
    %17 = arith.truncf %16 : vector<8x640xf32> to vector<8x640xbf16>
    %c0_12 = arith.constant 0 : index
    %c0_13 = arith.constant 0 : index
    %18 = vector.load %arg6[%c0_12, %c0_13] : memref<640x128xbf16, #tpu.memory_space<vmem>>, vector<640x128xbf16>
    %cst_14 = arith.constant dense<0.000000e+00> : vector<8x128xf32>
    %19 = tpu.matmul %17, %18, %cst_14 {dimension_numbers = #tpu.dot_dimension_numbers<[1], [0], [0], [1], [0, 0, 1, 1], [], []>} : vector<8x640xbf16>, vector<640x128xbf16>, vector<8x128xf32> -> vector<8x128xf32>
    %c0_15 = arith.constant 0 : index
    %c0_16 = arith.constant 0 : index
    %20 = vector.load %arg7[%c0_15, %c0_16] : memref<1x128xf32, #tpu.memory_space<vmem>>, vector<1x128xf32>
    %21 = vector.broadcast %20 : vector<1x128xf32> to vector<8x128xf32>
    %22 = arith.addf %19, %21 : vector<8x128xf32>
    %23 = tpu.iota {dimensions = array<i32: 1>} : vector<8x128xi32>
    %cst_17 = arith.constant 0.000000e+00 : f32
    %24 = vector.broadcast %cst_17 : f32 to vector<8x128xf32>
    %25 = arith.subf %24, %22 : vector<8x128xf32>
    %26 = math.exp %25 : vector<8x128xf32>
    %cst_18 = arith.constant 1.000000e+00 : f32
    %27 = vector.broadcast %cst_18 : f32 to vector<8x128xf32>
    %28 = arith.addf %27, %26 : vector<8x128xf32>
    %cst_19 = arith.constant 1.000000e+00 : f32
    %29 = vector.broadcast %cst_19 : f32 to vector<8x128xf32>
    %30 = arith.divf %29, %28 : vector<8x128xf32>
    %c0_i32 = arith.constant 0 : i32
    %31 = vector.broadcast %c0_i32 : i32 to vector<8x128xi32>
    %32 = arith.cmpi eq, %23, %31 : vector<8x128xi32>
    %33 = math.tanh %22 : vector<8x128xf32>
    %34 = arith.select %32, %33, %30 : vector<8x128xi1>, vector<8x128xf32>
    %c0_20 = arith.constant 0 : index
    %c0_21 = arith.constant 0 : index
    %35 = vector.load %arg8[%c0_20, %c0_21] : memref<8x128xf32, #tpu.memory_space<vmem>>, vector<8x128xf32>
    tpu.vector_store %arg8[%c0_20, %c0_21], %34 {strides = array<i32>} : memref<8x128xf32, #tpu.memory_space<vmem>>, vector<8x128xf32>,
    return
  }
  func.func @transform_0(%arg0: i32) -> (i32, i32) {
    %c0_i32 = arith.constant 0 : i32
    %c0_i32_0 = arith.constant 0 : i32
    return %arg0, %c0_i32 : i32, i32
  }
  func.func @transform_1(%arg0: i32) -> (i32, i32) {
    %c0_i32 = arith.constant 0 : i32
    %c0_i32_0 = arith.constant 0 : i32
    %c0_i32_1 = arith.constant 0 : i32
    return %c0_i32, %c0_i32_0 : i32, i32
  }
  func.func @transform_2(%arg0: i32) -> (i32, i32) {
    %c0_i32 = arith.constant 0 : i32
    %c0_i32_0 = arith.constant 0 : i32
    %c0_i32_1 = arith.constant 0 : i32
    return %c0_i32, %c0_i32_0 : i32, i32
  }
  func.func @transform_3(%arg0: i32) -> (i32, i32) {
    %c0_i32 = arith.constant 0 : i32
    %c0_i32_0 = arith.constant 0 : i32
    %c0_i32_1 = arith.constant 0 : i32
    return %c0_i32, %c0_i32_0 : i32, i32
  }
  func.func @transform_4(%arg0: i32) -> (i32, i32) {
    %c0_i32 = arith.constant 0 : i32
    %c0_i32_0 = arith.constant 0 : i32
    %c0_i32_1 = arith.constant 0 : i32
    return %c0_i32, %c0_i32_0 : i32, i32
  }
  func.func @transform_5(%arg0: i32) -> (i32, i32) {
    %c0_i32 = arith.constant 0 : i32
    %c0_i32_0 = arith.constant 0 : i32
    %c0_i32_1 = arith.constant 0 : i32
    return %c0_i32, %c0_i32_0 : i32, i32
  }
  func.func @transform_6(%arg0: i32) -> (i32, i32) {
    %c0_i32 = arith.constant 0 : i32
    %c0_i32_0 = arith.constant 0 : i32
    %c0_i32_1 = arith.constant 0 : i32
    return %c0_i32, %c0_i32_0 : i32, i32
  }
  func.func @transform_7(%arg0: i32) -> (i32, i32) {
    %c0_i32 = arith.constant 0 : i32
    %c0_i32_0 = arith.constant 0 : i32
    return %arg0, %c0_i32 : i32, i32
  }
}

</mosaic_0001>

<bundles_post_ra>
// kernel: tpu_custom_call.1
= control target key start
LH: loop header
LB: loop body
LE: loop exit
PB: predicated region body
PF: predicated region fallthrough
CT: control target
= control target key end

     0   :  { %s3325_s0 = inlined_call_operand.hbm [shape: f32[16,32], index: 0, kind: input, shape index: {}]   ;;  %s3326_s1 = inlined_call_operand.hbm [shape: bf16[32,384], index: 1, kind: input, shape index: {}]   ;;  %s3327_s2 = inlined_call_operand.vmem [shape: f32[1,384], index: 2, kind: input, shape index: {}]   ;;  %s3328_s3 = inlined_call_operand.hbm [shape: bf16[384,640], index: 3, kind: input, shape index: {}]   ;;  %s3329_s4 = inlined_call_operand.vmem [shape: f32[1,640], index: 4, kind: input, shape index: {}]   ;;  %s3330_s5 = inlined_call_operand.hbm [shape: bf16[640,128], index: 5, kind: input, shape index: {}]   ;;  %s3331_s6 = inlined_call_operand.vmem [shape: f32[1,128], index: 6, kind: input, shape index: {}]   ;;  %s3332_s7 = inlined_call_operand.hbm [shape: f32[16,128], index: 7, kind: output, shape index: {}]  }
   0x1   :  { %3336 = sst [smem:[#allocation15_spill]] %s3326_s1 }
   0x2   :  { %12 = vsyncpa [#allocation3], 0 }
   0x3   :  { %14 = vsyncpa [#allocation3 + $0x1], 0 }
   0x4   :  { %15 = vsyncpa [#allocation6], 0 }
   0x5   :  { %16 = vsyncpa [#allocation9], 0 }
   0x6   :  { %17 = vsyncpa [#allocation4], 0 }
   0x7   :  { %19 = vsyncpa [#allocation4 + $0x1], 0  ;;  %s2996_s24 = smov 0   ;;  %s2998_s25 = smov 0  }
   0x8   :  { %s3000_s26 = smov 0   ;;  %s3002_s27 = smov 0  }
   0x9 LB: > { %s3017_s28 = sadd.s32 4294967295, %s2940_s27   ;;  %s2110_s29 = sadd.s32 4294967294, %s2940_s27   ;;  %s2940_s27 = sphi %s3002_s27, %s3357_s27   ;;  %s2936_s26 = sphi %s3000_s26, %s3356_s26   ;;  %s2932_s25 = sphi %s2998_s25, %s3355_s25   ;;  %s2928_s24 = sphi %s2996_s24, %s3354_s24  }
   0xa   : > { %p45_p0 = scmp.ne.s32.totalorder %s2932_s25, %s2928_s24  ;;  %p3333_p1 = scmp.eq.s32.totalorder %s3017_s28, 0 }
   0xb   : > { %p201_p3 = scmp.eq.s32.totalorder %s2110_s29, 1  ;;  %p2111_p5 = scmp.ge.s32.totalorder %s2940_s27, 1 }
   0xc   : > { %p3026_p4 = por %p3333_p1, %p45_p0  ;;  %p208_p7 = scmp.lt.s32.totalorder %s2940_s27, 3 }
   0xd   : > { %p3031_p6 = por %p201_p3, %p45_p0  ;;  %s2942_s10 = smov [#allocation5]  }
   0xe   : > { %s3337_s30 = scalar_select %p3026_p4, 1, 0 }
   0xf   : > { %s3338_s8 = scalar_select %p3031_p6, 1, 0 }
  0x10   : > { %p3036_p8 = pnand %p2111_p5, %p208_p7  ;;  %s220_s11 = sshll.u32 %s2942_s10, 4  ;;  %s3040_s11 = int_to_ptr.vmem [resolvable:$true] %s220_s11 }
  0x11   : > { %s2943_s13 = smov [#allocation7]   ;;  %s3341_s1 = sld [smem:[#allocation15_spill]] }
  0x12   : > { %s3339_s9 = scalar_select %p3036_p8, 1, 0 }
  0x13   : > { %p2460_p9 = pneg %p3036_p8  ;;  %s236_s14 = sshll.u32 %s2943_s13, 4  ;;  %s3051_s14 = int_to_ptr.vmem [resolvable:$true] %s236_s14 }
  0x15   : > { %p3047_p11 = pnand %p2460_p9, %p3333_p1 }
  0x17   : > { %s2752_s17 = scalar_lea.hbm %s3341_s1, 768  ;;  %p3061_p13 = pneg %p3047_p11 }
  0x18   : > { %p2753_p12 = scmp.ne.s32.totalorder %s3341_s1, %s2752_s17  ;;  %p2759_p5 = scmp.lt.u32.totalorder %s2752_s17, %s3341_s1 }
  0x1a   : > { %p2755_p0 = pnand %p3061_p13, %p2753_p12 }
  0x1c   : > { %p2756_p3 = pneg %p2755_p0 }
  0x1e   : > { %p2761_p7 = pnand %p2759_p5, %p2756_p3 }
  0x20   : > { %2764 = shalt.err (!%p2761_p7)
}
  0x21   : > { %s2765_s23 = scalar_lea.vmem %s3040_s11, 768  ;;  %p2773_p2 = scmp.lt.s32.totalorder %s3040_s11, %s3040_s11 }
  0x22   : > { %p2766_p9 = scmp.ne.s32.totalorder %s3040_s11, %s2765_s23  ;;  %p2774_p6 = scmp.lt.s32.totalorder %s2765_s23, %s2765_s23 }
  0x24   : > { %p2768_p10 = pnand %p2766_p9, %p3061_p13  ;;  %p2775_p12 = por %p2774_p6, %p2773_p2 }
  0x26   : > { %p2769_p1 = pneg %p2768_p10 }
  0x28   : > { %p2776_p0 = pnand %p2775_p12, %p2769_p1 }
  0x2a   : > { %2779 = shalt.err (!%p2776_p0)
}
  0x2b   : > { %s2944_s29 = smov 192   ;;  %s2945_s10 = smov 12  }
  0x2c   : > { %2463 = dma.hbm_to_vmem [thread:$0]  (!%p3047_p11), %s3341_s1, 768, %s3040_s11, [#allocation6], %s2944_s29, %s2944_s29, %s2945_s10  }
  0x2d   : > { %s2780_s18 = scalar_lea.hbm %s3328_s3, 15360 }
  0x2e   : > { %p2781_p2 = scmp.ne.s32.totalorder %s3328_s3, %s2780_s18  ;;  %p2787_p10 = scmp.lt.u32.totalorder %s2780_s18, %s3328_s3 }
  0x30   : > { %p2783_p1 = pnand %p2781_p2, %p3061_p13 }
  0x32   : > { %p2784_p6 = pneg %p2783_p1 }
  0x34   : > { %p2789_p3 = pnand %p2787_p10, %p2784_p6 }
  0x36   : > { %2792 = shalt.err (!%p2789_p3)
}
  0x37   : > { %s2793_s11 = scalar_lea.vmem %s3051_s14, 15360  ;;  %p2801_p12 = scmp.lt.s32.totalorder %s3051_s14, %s3051_s14 }
  0x38   : > { %p2794_p5 = scmp.ne.s32.totalorder %s3051_s14, %s2793_s11  ;;  %p2802_p0 = scmp.lt.s32.totalorder %s2793_s11, %s2793_s11 }
  0x3a   : > { %p2796_p7 = pnand %p2794_p5, %p3061_p13  ;;  %p2803_p2 = por %p2802_p0, %p2801_p12 }
  0x3c   : > { %p2797_p9 = pneg %p2796_p7 }
  0x3e   : > { %p2804_p1 = pnand %p2803_p2, %p2797_p9 }
  0x40   : > { %2807 = shalt.err (!%p2804_p1)
}
  0x41   : > { %s2946_s29 = smov 320   ;;  %s2947_s10 = smov 20  }
  0x42   : > { %2466 = dma.hbm_to_vmem [thread:$0]  (!%p3047_p11), %s3328_s3, 15360, %s3051_s14, [#allocation6], %s2946_s29, %s2946_s29, %s2947_s10  }
  0x43   : > { %s2948_s16 = smov [#allocation8]   ;;  %s2808_s21 = scalar_lea.hbm %s3330_s5, 5120 }
  0x44   : > { %s252_s17 = sshll.u32 %s2948_s16, 4  ;;  %p2809_p6 = scmp.ne.s32.totalorder %s3330_s5, %s2808_s21  ;;  %s253_s17 = int_to_ptr.vmem [resolvable:$true] %s252_s17 }
  0x45   : > { %p2815_p5 = scmp.lt.u32.totalorder %s2808_s21, %s3330_s5 }
  0x46   : > { %p2811_p10 = pnand %p2809_p6, %p3061_p13 }
  0x48   : > { %p2812_p3 = pneg %p2811_p10 }
  0x4a   : > { %p2817_p7 = pnand %p2815_p5, %p2812_p3 }
  0x4c   : > { %2820 = shalt.err (!%p2817_p7)
}
  0x4d   : > { %s2821_s14 = scalar_lea.vmem %s253_s17, 5120  ;;  %p2829_p2 = scmp.lt.s32.totalorder %s253_s17, %s253_s17 }
  0x4e   : > { %p2822_p9 = scmp.ne.s32.totalorder %s253_s17, %s2821_s14  ;;  %p2830_p1 = scmp.lt.s32.totalorder %s2821_s14, %s2821_s14 }
  0x50   : > { %p2824_p12 = pnand %p2822_p9, %p3061_p13  ;;  %p2831_p4 = por %p2830_p1, %p2829_p2 }
  0x52   : > { %p2825_p0 = pneg %p2824_p12 }
  0x54   : > { %p2832_p8 = pnand %p2831_p4, %p2825_p0 }
  0x56   : > { %2835 = shalt.err (!%p2832_p8)
}
  0x57   : > { %s2949_s29 = smov 64   ;;  %s2950_s1 = smov 4  }
  0x58   : > { %2469 = dma.hbm_to_vmem [thread:$0]  (!%p3047_p11), %s3330_s5, 5120, %s253_s17, [#allocation9], %s2949_s29, %s2949_s29, %s2950_s1  }
  0x59   : > { %s3124_s13 = sadd.s32 1, %s2940_s27   ;;  %s32_s16 = sadd.s32 1, %s2936_s26 }
  0x5a   : > { %s29_s15 = ssub.s32 %s2940_s27, %s3124_s13  ;;  %p39_p8 = scmp.ne.s32.totalorder %s2936_s26, %s2932_s25 }
  0x5b   : > { %p30_p4 = scmp.eq.s32.totalorder %s29_s15, 0  ;;  %p40_p13 = scmp.eq.s32.totalorder %s2940_s27, 0 }
  0x5c   : > { %p2481_p6 = scmp.lt.s32.totalorder %s2940_s27, 2  ;;  %p3343_p3 = scmp.eq.s32.totalorder %s3017_s28, 1 }
  0x5d   : > { %s3134_s18 = scalar_select %p30_p4, %s2936_s26, %s32_s16  }
  0x5e   : > { %p41_p10 = por %p40_p13, %p39_p8  ;;  %p3138_p5 = por %p3343_p3, %p39_p8 }
  0x5f   : > { %s269_s12 = sand.u32 1, %s2936_s26   ;;  %s2117_s21 = sshll.u32 %s2940_s27, 7 }
  0x60   : > { %s2116_s17 = sshll.u32 %s269_s12, 3  ;;  %s3147_s11 = scalar_lea.hbm %s3325_s0, %s2117_s21 }
  0x61   : > { %s273_s14 = scalar_lea.vmem [#allocation2], %s2116_s17  ;;  %p3149_p11 = pnand %p2481_p6, %p41_p10 }
  0x62   : > { %s280_s29 = sshll.u32 %s273_s14, 4  ;;  %s270_s20 = scalar_lea.sflag [#allocation3], %s269_s12  ;;  %s3153_s29 = int_to_ptr.vmem [resolvable:$true] %s280_s29 }
  0x63   : > { %s2836_s10 = scalar_lea.hbm %s3147_s11, 128  ;;  %p2838_p9 = pneg %p3149_p11 }
  0x64   : > { %p2837_p7 = scmp.ne.s32.totalorder %s3147_s11, %s2836_s10  ;;  %s2841_s21 = scalar_lea.hbm %s3325_s0, 256 }
  0x65   : > { %p2842_p2 = scmp.lt.u32.totalorder %s3147_s11, %s3325_s0  ;;  %p2843_p1 = scmp.lt.u32.totalorder %s2841_s21, %s2836_s10 }
  0x66   : > { %p2839_p12 = pnand %p2838_p9, %p2837_p7  ;;  %p2845_p8 = scmp.lt.u32.totalorder %s2836_s10, %s3147_s11 }
  0x67   : > { %p2844_p4 = por %p2843_p1, %p2842_p2 }
  0x68   : > { %p2840_p0 = pneg %p2839_p12 }
  0x69   : > { %p2846_p13 = por %p2845_p8, %p2844_p4 }
  0x6b   : > { %p2847_p6 = pnand %p2846_p13, %p2840_p0 }
  0x6d   : > { %2850 = shalt.err (!%p2847_p6)
}
  0x6e   : > { %s2851_s12 = scalar_lea.vmem %s3153_s29, 128  ;;  %s2951_s23 = smov [#allocation2]  }
  0x6f   : > { %p2852_p10 = scmp.ne.s32.totalorder %s3153_s29, %s2851_s12  ;;  %s2856_s14 = sshll.u32 %s2951_s23, 4  ;;  %s2857_s14 = int_to_ptr.vmem [resolvable:$false] %s2856_s14 }
  0x70   : > { %s2858_s15 = scalar_lea.vmem %s2857_s14, 256  ;;  %p2859_p12 = scmp.lt.s32.totalorder %s3153_s29, %s2857_s14 }
  0x71   : > { %p2854_p3 = pnand %p2852_p10, %p2838_p9  ;;  %p2860_p2 = scmp.lt.s32.totalorder %s2858_s15, %s2851_s12 }
  0x73   : > { %p2855_p7 = pneg %p2854_p3  ;;  %p2861_p1 = por %p2860_p2, %p2859_p12 }
  0x75   : > { %p2862_p4 = pnand %p2861_p1, %p2855_p7 }
  0x77   : > { %2865 = shalt.err (!%p2862_p4)
}
  0x78   : > { %2473 = dma.hbm_to_vmem [thread:$0]  (!%p3149_p11), %s3147_s11, 128, %s3153_s29, %s270_s20  }
  0x79   : > { %p3346_p0 = scmp.ne.s32.totalorder %s3339_s9, 0 }
  0x7a   : > { %s3183_s10 = sand.u32 (!%p3346_p0), 1, %s2932_s25   ;;  %p3347_p9 = scmp.ne.s32.totalorder (!%p3346_p0), %s3337_s30, 0 }
  0x7b   : > { %289 = sbr.rel (%p3346_p0) target bundleno = 911 (0x38f), region = 48  ;;  %s2119_s16 = sshll.u32 (!%p3346_p0), %s3183_s10, 3 }
  0x7c   : > { %s292_s21 = scalar_lea.sflag (!%p3346_p0), [#allocation3], %s3183_s10  ;;  %s295_s17 = scalar_lea.vmem (!%p3346_p0), [#allocation2], %s2119_s16 }
  0x82   : > { %2911 = dma.done.wait (%p3347_p9), %s292_s21, 128  }
  0x83   : > { %2913 = vsyncadd (%p3347_p9), %s292_s21, 4294967168  ;;  %p3348_p11 = scmp.eq.s32.totalorder %s3017_s28, 0 }
  0x85   : > { %2915 = dma.done.wait (%p3348_p11), [#allocation6], 16128   ;;  %p3349_p8 = pmov %p3348_p11 }
  0x87   : > { %2917 = vsyncadd (%p3349_p8), [#allocation6], 4294951168  ;;  %p3350_p13 = pmov %p3349_p8 }
  0x88   : > { %p3351_p6 = pmov %p3349_p8 }
  0x89   : > { %2919 = dma.done.wait (%p3350_p13), [#allocation9], 5120  }
  0x8a   : > { %2921 = vsyncadd (%p3351_p6), [#allocation9], 4294962176  ;;  %v2952_v0 = vmov 0   ;;  %v2530_v1 = vld [vmem:[#allocation5 + $0x4] ss:$12 sps:$4 sm:$0xff]   ;;  %vm398_vm0 = vcmask 261120  }
  0x8b   : > { %434 = vmatprep.mubr.bf16.mxu1 %v2952_v0  ;;  %v2532_v2 = vld [vmem:[#allocation5] ss:$12 sps:$4 sm:$0xff]   ;;  %402 = vmatprep.subr.bf16.mxu1 %v2530_v1  ;;  %v2533_v3 = vld [vmem:[#allocation5 + $0x1c] ss:$12 sps:$4 sm:$0xff]   ;;  %v2535_v4 = vld [vmem:[#allocation5 + $0x18] ss:$12 sps:$4 sm:$0xff]  }
  0x8c   : > { %403 = vmatpush1.bf16.msra.mxu1 %v2532_v2  ;;  %v339_v5 = vld [vmem:[%s295_s17] sm:$0xff]  ;;  %v2953_v10 = vmov 0.0   ;;  %v2537_v12 = vld [vmem:[#allocation5 + $0x20] ss:$12 sps:$4 sm:$0xff]   ;;  %vm2954_vm1 = vmmov 0   ;;  %s2294_s22 = sshll.u32 %s3017_s28, 7 }
  0x8d   : > { %404 = vmatprep.subr.bf16.mxu1 %v2533_v3  ;;  %v2538_v6 = vld [vmem:[#allocation7 + $0x4] ss:$20 sps:$4 sm:$0xff]   ;;  %v340_v7 = vpack.c.bf16 %v339_v5, %v339_v5  ;;  %v2543_v9 = vld [vmem:[#allocation7] ss:$20 sps:$4 sm:$0xff]   ;;  %v2549_v13 = vld [vmem:[#allocation7 + $0x28] ss:$20 sps:$4 sm:$0xff]   ;;  %s3281_s21 = scalar_lea.hbm %s3332_s7, %s2294_s22 }
  0x8e   : > { %v2536_v8 = vld [vmem:[#allocation5 + $0x8] ss:$12 sps:$4 sm:$0xff]   ;;  %1284 = vmatprep.subr.bf16.mxu0 %v2538_v6  ;;  %v2544_v11 = vld [vmem:[#allocation7 + $0x2c] ss:$20 sps:$4 sm:$0xff]   ;;  %v2550_v14 = vld [vmem:[#allocation7 + $0x54] ss:$20 sps:$4 sm:$0xff]  }
  0x8f   : > { %1285 = vmatpush1.bf16.msra.mxu0 %v2543_v9  ;;  %v2542_v15 = vld [vmem:[#allocation7 + $0xc] ss:$20 sps:$4 sm:$0xff]   ;;  %v2555_v16 = vld [vmem:[#allocation7 + $0x50] ss:$20 sps:$4 sm:$0xff]   ;;  %v2540_v18 = vld [vmem:[#allocation7 + $0x8] ss:$20 sps:$4 sm:$0xff]  }
  0x90   : > { %405 = vmatpush1.bf16.msra.mxu1 %v2535_v4  ;;  %1286 = vmatprep.subr.bf16.mxu0 %v2544_v11  ;;  %v2556_v17 = vld [vmem:[#allocation7 + $0x7c] ss:$20 sps:$4 sm:$0xff]   ;;  %v2548_v19 = vld [vmem:[#allocation7 + $0x34] ss:$20 sps:$4 sm:$0xff]   ;;  %v2561_v20 = vld [vmem:[#allocation7 + $0x78] ss:$20 sps:$4 sm:$0xff]  }
  0x91   : > { %2384 = vmatprep.subr.bf16.mxu1 %v2953_v10  ;;  %v2562_v21 = vld [vmem:[#allocation7 + $0xa4] ss:$20 sps:$4 sm:$0xff]   ;;  %v2554_v23 = vld [vmem:[#allocation7 + $0x5c] ss:$20 sps:$4 sm:$0xff]   ;;  %v2567_v24 = vld [vmem:[#allocation7 + $0xa0] ss:$20 sps:$4 sm:$0xff]  }
  0x92   : > { %v2546_v22 = vld [vmem:[#allocation7 + $0x30] ss:$20 sps:$4 sm:$0xff]   ;;  %v2568_v25 = vld [vmem:[#allocation7 + $0xcc] ss:$20 sps:$4 sm:$0xff]   ;;  %v2573_v28 = vld [vmem:[#allocation7 + $0xc8] ss:$20 sps:$4 sm:$0xff]  }
  0x93   : > { %2130 = vmatmul.mubr.msk.bf16.vlgmr.msra.gmra.mrb[0].mxu1 %vm398_vm0, %v340_v7  ;;  %1287 = vmatpush1.bf16.msra.mxu0 %v2549_v13  ;;  %v2552_v26 = vld [vmem:[#allocation7 + $0x58] ss:$20 sps:$4 sm:$0xff]   ;;  %v2574_v29 = vld [vmem:[#allocation7 + $0xf4] ss:$20 sps:$4 sm:$0xff]   ;;  %v2579_v32 = vld [vmem:[#allocation7 + $0xf0] ss:$20 sps:$4 sm:$0xff]  }
  0x94   : > { %2385 = vmatpush3.bf16.msra.mxu1 %v2536_v8  ;;  %2388 = vmatprep.mubr.msk.bf16.mxu1 %vm2954_vm1, %v2953_v10  ;;  %v2560_v27 = vld [vmem:[#allocation7 + $0x84] ss:$20 sps:$4 sm:$0xff]   ;;  %v2558_v30 = vld [vmem:[#allocation7 + $0x80] ss:$20 sps:$4 sm:$0xff]   ;;  %v2580_v33 = vld [vmem:[#allocation7 + $0x11c] ss:$20 sps:$4 sm:$0xff]  }
  0x95   : > { %2386 = vmatprep.subr.bf16.mxu1 %v2953_v10  ;;  %1288 = vmatprep.subr.bf16.mxu0 %v2550_v14  ;;  %v2566_v31 = vld [vmem:[#allocation7 + $0xac] ss:$20 sps:$4 sm:$0xff]   ;;  %v2564_v34 = vld [vmem:[#allocation7 + $0xa8] ss:$20 sps:$4 sm:$0xff]   ;;  %v2586_v37 = vld [vmem:[#allocation7 + $0x144] ss:$20 sps:$4 sm:$0xff]   ;;  %v351_v14 = vlaneseq }
  0x96   : > { %v2572_v35 = vld [vmem:[#allocation7 + $0xd4] ss:$20 sps:$4 sm:$0xff]   ;;  %v2585_v36 = vld [vmem:[#allocation7 + $0x118] ss:$20 sps:$4 sm:$0xff]   ;;  %v2570_v38 = vld [vmem:[#allocation7 + $0xd0] ss:$20 sps:$4 sm:$0xff]  }
  0x97   : > { %1289 = vmatpush1.bf16.msra.mxu0 %v2555_v16  ;;  %v2578_v39 = vld [vmem:[#allocation7 + $0xfc] ss:$20 sps:$4 sm:$0xff]   ;;  %v2591_v40 = vld [vmem:[#allocation7 + $0x140] ss:$20 sps:$4 sm:$0xff]   ;;  %v2576_v42 = vld [vmem:[#allocation7 + $0xf8] ss:$20 sps:$4 sm:$0xff]  }
  0x98   : > { %2387 = vmatpush3.bf16.msra.mxu1 %v2537_v12  ;;  %1290 = vmatprep.subr.bf16.mxu0 %v2556_v17  ;;  %v2592_v41 = vld [vmem:[#allocation7 + $0x16c] ss:$20 sps:$4 sm:$0xff]   ;;  %v2584_v43 = vld [vmem:[#allocation7 + $0x124] ss:$20 sps:$4 sm:$0xff]   ;;  %v2597_v45 = vld [vmem:[#allocation7 + $0x168] ss:$20 sps:$4 sm:$0xff]  }
  0x99   : > { %1366 = vmatprep.subr.bf16.mxu1 %v2542_v15  ;;  %v2582_v44 = vld [vmem:[#allocation7 + $0x120] ss:$20 sps:$4 sm:$0xff]   ;;  %v2603_v48 = vld [vmem:[#allocation7 + $0x190] ss:$20 sps:$4 sm:$0xff]   ;;  %v2588_v50 = vld [vmem:[#allocation7 + $0x148] ss:$20 sps:$4 sm:$0xff]  }
  0x9a   : > { %v2590_v46 = vld [vmem:[#allocation7 + $0x14c] ss:$20 sps:$4 sm:$0xff]   ;;  %v2598_v47 = vld [vmem:[#allocation7 + $0x194] ss:$20 sps:$4 sm:$0xff]   ;;  %v2604_v49 = vld [vmem:[#allocation7 + $0x1bc] ss:$20 sps:$4 sm:$0xff]  }
  0x9b   : > { %2389 = vmatmul.mubr.msk.bf16.vlgmr.msra.gmra.mrb[4].mxu1 %vm398_vm0, %v340_v7  ;;  %1291 = vmatpush1.bf16.msra.mxu0 %v2561_v20  ;;  %v2596_v51 = vld [vmem:[#allocation7 + $0x174] ss:$20 sps:$4 sm:$0xff]   ;;  %v2609_v52 = vld [vmem:[#allocation7 + $0x1b8] ss:$20 sps:$4 sm:$0xff]   ;;  %v2594_v54 = vld [vmem:[#allocation7 + $0x170] ss:$20 sps:$4 sm:$0xff]  }
  0x9c   : > { %1367 = vmatpush1.bf16.msra.mxu1 %v2540_v18  ;;  %1292 = vmatprep.subr.bf16.mxu0 %v2562_v21  ;;  %v2610_v53 = vld [vmem:[#allocation7 + $0x1e4] ss:$20 sps:$4 sm:$0xff]   ;;  %v2602_v55 = vld [vmem:[#allocation7 + $0x19c] ss:$20 sps:$4 sm:$0xff]   ;;  %v2615_v56 = vld [vmem:[#allocation7 + $0x1e0] ss:$20 sps:$4 sm:$0xff]  }
  0x9d   : > { %1368 = vmatprep.subr.bf16.mxu1 %v2548_v19  ;;  %v2616_v57 = vld [vmem:[#allocation7 + $0x20c] ss:$20 sps:$4 sm:$0xff]   ;;  %v2608_v59 = vld [vmem:[#allocation7 + $0x1c4] ss:$20 sps:$4 sm:$0xff]   ;;  %v2621_v60 = vld [vmem:[#allocation7 + $0x208] ss:$20 sps:$4 sm:$0xff]  }
  0x9e   : > { %v2600_v58 = vld [vmem:[#allocation7 + $0x198] ss:$20 sps:$4 sm:$0xff]   ;;  %v2606_v61 = vld [vmem:[#allocation7 + $0x1c0] ss:$20 sps:$4 sm:$0xff]   ;;  %v2612_v63 = vld [vmem:[#allocation7 + $0x1e8] ss:$20 sps:$4 sm:$0xff]  }
  0x9f   : > { %1293 = vmatpush1.bf16.msra.mxu0 %v2567_v24  ;;  %v2614_v62 = vld [vmem:[#allocation7 + $0x1ec] ss:$20 sps:$4 sm:$0xff]   ;;  %v2620_v1 = vld [vmem:[#allocation7 + $0x214] ss:$20 sps:$4 sm:$0xff]   ;;  %v2618_v2 = vld [vmem:[#allocation7 + $0x210] ss:$20 sps:$4 sm:$0xff]  }
  0xa0   : > { %1369 = vmatpush1.bf16.msra.mxu1 %v2546_v22  ;;  %1294 = vmatprep.subr.bf16.mxu0 %v2568_v25  ;;  %v2622_v3 = vld [vmem:[#allocation7 + $0x234] ss:$20 sps:$4 sm:$0xff]   ;;  %v2626_v4 = vld [vmem:[#allocation7 + $0x23c] ss:$20 sps:$4 sm:$0xff]   ;;  %v2624_v5 = vld [vmem:[#allocation7 + $0x238] ss:$20 sps:$4 sm:$0xff]  }
  0xa1   : > { %1370 = vmatprep.subr.bf16.mxu1 %v2554_v23  ;;  %v2627_v6 = vld [vmem:[#allocation7 + $0x230] ss:$20 sps:$4 sm:$0xff]   ;;  %v2630_v9 = vld [vmem:[#allocation7 + $0x260] ss:$20 sps:$4 sm:$0xff]   ;;  %v2633_v11 = vld [vmem:[#allocation7 + $0x258] ss:$20 sps:$4 sm:$0xff]  }
  0xa2   : > { %v2628_v7 = vld [vmem:[#allocation7 + $0x25c] ss:$20 sps:$4 sm:$0xff]   ;;  %v2632_v8 = vld [vmem:[#allocation7 + $0x264] ss:$20 sps:$4 sm:$0xff]   ;;  %v2639_v13 = vld [vmem:[#allocation7 + $0x28c] ss:$20 sps:$4 sm:$0xff]  }
  0xa3   : > { %1295 = vmatpush1.bf16.msra.mxu0 %v2573_v28  ;;  %v2636_v12 = vld [vmem:[#allocation7 + $0x284] ss:$20 sps:$4 sm:$0xff]   ;;  %v3209_v15 = vshrl.u32 %v351_v14, 7  ;;  %v349_v17 = vld [vmem:[%s3327_s2] sm:$0x7]  ;;  %s337_s12 = scalar_lea.vmem [#allocation10], %s2119_s16 }
  0xa4   : > { %1371 = vmatpush1.bf16.msra.mxu1 %v2552_v26  ;;  %1296 = vmatprep.subr.bf16.mxu0 %v2574_v29  ;;  %s2011_s23 = sshll.u32 %s337_s12, 4  ;;  %s1998_s17 = scalar_lea.sflag [#allocation4], %s3183_s10  ;;  %s3283_s23 = int_to_ptr.vmem [resolvable:$true] %s2011_s23 }
  0xa5   : > { %1372 = vmatprep.subr.bf16.mxu1 %v2560_v27  ;;  %v353_v16 = vsub.s32 0, %v3209_v15  ;;  %v357_v18 = vsub.s32 1, %v3209_v15  ;;  %s2866_s28 = scalar_lea.vmem %s3283_s23, 128  ;;  %s2955_s16 = smov [#allocation10]  }
  0xa6   : > { %p2867_p10 = scmp.ne.s32.totalorder %s3283_s23, %s2866_s28  ;;  %s2870_s30 = sshll.u32 %s2955_s16, 4  ;;  %s2871_s30 = int_to_ptr.vmem [resolvable:$false] %s2870_s30 }
  0xa7   : > { %1297 = vmatpush1.bf16.msra.mxu0 %v2579_v32  ;;  %v354_v19 = vrot.slane %v349_v17, %v353_v16  ;;  %v358_v20 = vrot.slane %v349_v17, %v357_v18  ;;  %s2872_s9 = scalar_lea.vmem %s2871_s30, 256  ;;  %p2873_p12 = scmp.lt.s32.totalorder %s3283_s23, %s2871_s30 }
  0xa8   : > { %1373 = vmatpush1.bf16.msra.mxu1 %v2558_v30  ;;  %1298 = vmatprep.subr.bf16.mxu0 %v2580_v33  ;;  %v2634_v30 = vld [vmem:[#allocation7 + $0x280] ss:$20 sps:$4 sm:$0xff]   ;;  %p2868_p3 = pnand %p2867_p10, %p3138_p5  ;;  %p2874_p2 = scmp.lt.s32.totalorder %s2872_s9, %s2866_s28 }
  0xa9   : > { %1374 = vmatprep.subr.bf16.mxu1 %v2566_v31  ;;  %v2637_v31 = vld [vmem:[#allocation7 + $0x288] ss:$20 sps:$4 sm:$0xff]   ;;  %v2642_v33 = vld [vmem:[#allocation7 + $0x2ac] ss:$20 sps:$4 sm:$0xff]  }
  0xaa   : > { %p2869_p7 = pneg %p2868_p3  ;;  %p2875_p1 = por %p2874_p2, %p2873_p12 }
  0xab   : > { %1299 = vmatpush1.bf16.msra.mxu0 %v2585_v36 }
  0xac   : > { %1375 = vmatpush1.bf16.msra.mxu1 %v2564_v34  ;;  %1300 = vmatprep.subr.bf16.mxu0 %v2586_v37  ;;  %v2645_v34 = vld [vmem:[#allocation7 + $0x2b4] ss:$20 sps:$4 sm:$0xff]   ;;  %p2876_p4 = pnand %p2875_p1, %p2869_p7 }
  0xad   : > { %1376 = vmatprep.subr.bf16.mxu1 %v2572_v35  ;;  %v2640_v37 = vld [vmem:[#allocation7 + $0x2a8] ss:$20 sps:$4 sm:$0xff]  }
  0xaf   : > { %1301 = vmatpush1.bf16.msra.mxu0 %v2591_v40  ;;  %v2648_v40 = vld [vmem:[#allocation7 + $0x2d4] ss:$20 sps:$4 sm:$0xff]  }
  0xb0   : > { %1377 = vmatpush1.bf16.msra.mxu1 %v2570_v38  ;;  %1302 = vmatprep.subr.bf16.mxu0 %v2592_v41  ;;  %v2643_v38 = vld [vmem:[#allocation7 + $0x2b0] ss:$20 sps:$4 sm:$0xff]  }
  0xb1   : > { %1378 = vmatprep.subr.bf16.mxu1 %v2578_v39  ;;  %v2651_v41 = vld [vmem:[#allocation7 + $0x2dc] ss:$20 sps:$4 sm:$0xff]  }
  0xb3   : > { %1303 = vmatpush1.bf16.msra.mxu0 %v2597_v45  ;;  %v2654_v45 = vld [vmem:[#allocation7 + $0x2fc] ss:$20 sps:$4 sm:$0xff]  }
  0xb4   : > { %1379 = vmatpush1.bf16.msra.mxu1 %v2576_v42  ;;  %1304 = vmatprep.subr.bf16.mxu0 %v2598_v47  ;;  %v2652_v47 = vld [vmem:[#allocation7 + $0x2f8] ss:$20 sps:$4 sm:$0xff]  }
  0xb5   : > { %1380 = vmatprep.subr.bf16.mxu1 %v2584_v43  ;;  %v2646_v43 = vld [vmem:[#allocation7 + $0x2d0] ss:$20 sps:$4 sm:$0xff]  }
  0xb7   : > { %1305 = vmatpush1.bf16.msra.mxu0 %v2603_v48  ;;  %v2655_v48 = vld [vmem:[#allocation7 + $0x300] ss:$20 sps:$4 sm:$0xff]  }
  0xb8   : > { %1381 = vmatpush1.bf16.msra.mxu1 %v2582_v44  ;;  %1306 = vmatprep.subr.bf16.mxu0 %v2604_v49  ;;  %v2649_v44 = vld [vmem:[#allocation7 + $0x2d8] ss:$20 sps:$4 sm:$0xff]  }
  0xb9   : > { %1382 = vmatprep.subr.bf16.mxu1 %v2590_v46  ;;  %v2657_v46 = vld [vmem:[#allocation7 + $0x304] ss:$20 sps:$4 sm:$0xff]  }
  0xba   : > { %v2660_v49 = vld [vmem:[#allocation7 + $0x324] ss:$20 sps:$4 sm:$0xff]  }
  0xbb   : > { %1307 = vmatpush1.bf16.msra.mxu0 %v2609_v52  ;;  %v2661_v52 = vld [vmem:[#allocation7 + $0x328] ss:$20 sps:$4 sm:$0xff]  }
  0xbc   : > { %1383 = vmatpush1.bf16.msra.mxu1 %v2588_v50  ;;  %1308 = vmatprep.subr.bf16.mxu0 %v2610_v53  ;;  %v2663_v50 = vld [vmem:[#allocation7 + $0x32c] ss:$20 sps:$4 sm:$0xff]  }
  0xbd   : > { %1384 = vmatprep.subr.bf16.mxu1 %v2596_v51  ;;  %v361_v51 = vsub.s32 2, %v3209_v15  ;;  %v2666_v53 = vld [vmem:[#allocation7 + $0x34c] ss:$20 sps:$4 sm:$0xff]  }
  0xbf   : > { %1309 = vmatpush1.bf16.msra.mxu0 %v2615_v56  ;;  %v2664_v56 = vld [vmem:[#allocation7 + $0x348] ss:$20 sps:$4 sm:$0xff]  }
  0xc0   : > { %1385 = vmatpush1.bf16.msra.mxu1 %v2594_v54  ;;  %1310 = vmatprep.subr.bf16.mxu0 %v2616_v57  ;;  %v2669_v54 = vld [vmem:[#allocation7 + $0x354] ss:$20 sps:$4 sm:$0xff]   ;;  %v2667_v57 = vld [vmem:[#allocation7 + $0x350] ss:$20 sps:$4 sm:$0xff]  }
  0xc1   : > { %1386 = vmatprep.subr.bf16.mxu1 %v2602_v55  ;;  %v362_v55 = vrot.slane %v349_v17, %v361_v51  ;;  %v2689_v17 = vld [vmem:[#allocation7 + $0x60] ss:$20 sps:$4 sm:$0xff]  }
  0xc3   : > { %1311 = vmatpush1.bf16.msra.mxu0 %v2621_v60 }
  0xc4   : > { %1387 = vmatpush1.bf16.msra.mxu1 %v2600_v58  ;;  %1312 = vmatprep.subr.bf16.mxu0 %v2622_v3  ;;  %v2672_v58 = vld [vmem:[#allocation7 + $0x374] ss:$20 sps:$4 sm:$0xff]   ;;  %v2676_v3 = vld [vmem:[#allocation7 + $0x398] ss:$20 sps:$4 sm:$0xff]  }
  0xc5   : > { %1388 = vmatprep.subr.bf16.mxu1 %v2608_v59  ;;  %v2675_v59 = vld [vmem:[#allocation7 + $0x37c] ss:$20 sps:$4 sm:$0xff]  }
  0xc7   : > { %1313 = vmatpush1.bf16.msra.mxu0 %v2627_v6 }
  0xc8   : > { %1389 = vmatpush1.bf16.msra.mxu1 %v2606_v61  ;;  %1314 = vmatprep.subr.bf16.mxu0 %v2628_v7  ;;  %v2670_v61 = vld [vmem:[#allocation7 + $0x370] ss:$20 sps:$4 sm:$0xff]  }
  0xc9   : > { %1390 = vmatprep.subr.bf16.mxu1 %v2614_v62  ;;  %v2673_v62 = vld [vmem:[#allocation7 + $0x378] ss:$20 sps:$4 sm:$0xff]   ;;  %v2683_v7 = vld [vmem:[#allocation7 + $0x10] ss:$20 sps:$4 sm:$0xff]  }
  0xcb   : > { %1315 = vmatpush1.bf16.msra.mxu0 %v2633_v11  ;;  %v2686_v11 = vld [vmem:[#allocation7 + $0x38] ss:$20 sps:$4 sm:$0xff]  }
  0xcc   : > { %1391 = vmatpush1.bf16.msra.mxu1 %v2612_v63  ;;  %1325 = vmatprep.subr.bf16.mxu0 %v2636_v12  ;;  %v2678_v63 = vld [vmem:[#allocation7 + $0x39c] ss:$20 sps:$4 sm:$0xff]   ;;  %v2687_v12 = vld [vmem:[#allocation7 + $0x2b8] ss:$20 sps:$4 sm:$0xff]  }
  0xcd   : > { %1392 = vmatprep.subr.bf16.mxu1 %v2620_v1  ;;  %v2681_v1 = vld [vmem:[#allocation7 + $0x3a4] ss:$20 sps:$4 sm:$0xff]  }
  0xd0   : > { %1393 = vmatpush1.bf16.msra.mxu1 %v2618_v2 }
  0xd1   : > { %1394 = vmatprep.subr.bf16.mxu1 %v2626_v4  ;;  %v2679_v4 = vld [vmem:[#allocation7 + $0x3a0] ss:$20 sps:$4 sm:$0xff]  }
  0xd4   : > { %1395 = vmatpush1.bf16.msra.mxu1 %v2624_v5  ;;  %v2682_v5 = vld [vmem:[#allocation7 + $0x150] ss:$20 sps:$4 sm:$0xff]  }
  0xd5   : > { %1396 = vmatprep.subr.bf16.mxu1 %v2632_v8  ;;  %v2684_v8 = vld [vmem:[#allocation7 + $0x290] ss:$20 sps:$4 sm:$0xff]  }
  0xd8   : > { %1397 = vmatpush1.bf16.msra.mxu1 %v2630_v9  ;;  %v2685_v9 = vld [vmem:[#allocation7 + $0x178] ss:$20 sps:$4 sm:$0xff]  }
  0xd9   : > { %1407 = vmatprep.subr.bf16.mxu1 %v2639_v13  ;;  %v2688_v13 = vld [vmem:[#allocation7 + $0x1a0] ss:$20 sps:$4 sm:$0xff]  }
 0x166   : > { %v436_v21 = vpop.f32.mrb[0].mxu1 }
 0x167   : > { %v437_v22 = vadd.f32 %v436_v21, %v354_v19  ;;  %v438_v23 = vpop.f32.mrb[1].mxu1  ;;  %v2690_v19 = vld [vmem:[#allocation7 + $0x2e0] ss:$20 sps:$4 sm:$0xff]   ;;  %v2692_v21 = vld [vmem:[#allocation7 + $0x88] ss:$20 sps:$4 sm:$0xff]  }
 0x168   : > { %v439_v24 = vadd.f32 %v438_v23, %v358_v20  ;;  %v440_v25 = vpop.f32.mrb[2].mxu1  ;;  %v2691_v20 = vld [vmem:[#allocation7 + $0x1c8] ss:$20 sps:$4 sm:$0xff]   ;;  %v2694_v23 = vld [vmem:[#allocation7 + $0x1f0] ss:$20 sps:$4 sm:$0xff]  }
 0x169   : > { %v483_v26 = vmax.f32 %v437_v22, 0.0  ;;  %v441_v27 = vpop.f32.mrb[3].mxu1  ;;  %v2693_v22 = vld [vmem:[#allocation7 + $0x308] ss:$20 sps:$4 sm:$0xff]   ;;  %v2696_v25 = vld [vmem:[#allocation7 + $0x330] ss:$20 sps:$4 sm:$0xff]  }
 0x16a   : > { %v484_v28 = vmax.f32 %v439_v24, 0.0  ;;  %v2695_v24 = vld [vmem:[#allocation7 + $0xb0] ss:$20 sps:$4 sm:$0xff]   ;;  %v2698_v27 = vld [vmem:[#allocation7 + $0xd8] ss:$20 sps:$4 sm:$0xff]  }
 0x16b   : > { %v3222_v32 = vpack.c.bf16 %v483_v26, %v483_v26  ;;  %v2697_v26 = vld [vmem:[#allocation7 + $0x218] ss:$20 sps:$4 sm:$0xff]  }
 0x16c   : > { %v3220_v29 = vpack.c.bf16 %v484_v28, %v484_v28  ;;  %v2699_v28 = vld [vmem:[#allocation7 + $0x358] ss:$20 sps:$4 sm:$0xff]  }
 0x16e   : > { %1316 = vmatprep.mubr.bf16.mxu0 %v3220_v29  ;;  %1398 = vmatprep.mubr.bf16.mxu1 %v3220_v29  ;;  %v477_v35 = vpop.f32.mrb[4].mxu1 }
 0x16f   : > { %1317 = vmatmul.mubr.bf16.vlgmr.msra.gmra.mrb[0].mxu0 %v3222_v32  ;;  %1399 = vmatmul.mubr.bf16.vlgmr.msra.gmra.mrb[8].mxu1 %v3222_v32  ;;  %v2390_v36 = vpop.f32.mrb[5].mxu1  ;;  %v478_v60 = vadd.f32 %v477_v35, %v362_v55  ;;  %v2705_v35 = vld [vmem:[#allocation7 + $0x3a8] ss:$20 sps:$4 sm:$0xff]  }
 0x170   : > { %1326 = vmatpush1.bf16.msra.mxu0 %v2634_v30  ;;  %1408 = vmatpush1.bf16.msra.mxu1 %v2637_v31  ;;  %v480_v39 = vpop.f32.mrb[6].mxu1  ;;  %v2701_v30 = vld [vmem:[#allocation7 + $0x100] ss:$20 sps:$4 sm:$0xff]   ;;  %v2726_v55 = vld [vmem:[#allocation8 + $0x68] sm:$0xff]  }
 0x171   : > { %1327 = vmatprep.subr.bf16.mxu0 %v2642_v33  ;;  %1409 = vmatprep.subr.bf16.mxu1 %v2645_v34  ;;  %v2391_v42 = vpop.f32.mrb[7].mxu1  ;;  %v485_v2 = vmax.f32 %v478_v60, 0.0  ;;  %v2702_v31 = vld [vmem:[#allocation7 + $0x380] ss:$20 sps:$4 sm:$0xff]   ;;  %v2703_v33 = vld [vmem:[#allocation7 + $0x268] ss:$20 sps:$4 sm:$0xff]  }
 0x172   : > { %1357 = vmatprep.mubr.bf16.mxu0 %v2952_v0  ;;  %1439 = vmatprep.mubr.bf16.mxu1 %v2952_v0  ;;  %v2658_v0 = vld [vmem:[#allocation7 + $0x320] ss:$20 sps:$4 sm:$0xff]   ;;  %v2704_v34 = vld [vmem:[#allocation7 + $0x128] ss:$20 sps:$4 sm:$0xff]  }
 0x173   : > { %v3233_v6 = vpack.c.bf16 %v485_v2, %v485_v2  ;;  %v2706_v36 = vld [vmem:[#allocation8 + $0x40] sm:$0xff]   ;;  %v2712_v42 = vld [vmem:[#allocation8 + $0x8] sm:$0xff]   ;;  %v2731_v60 = vld [vmem:[#allocation8 + $0xf0] sm:$0xff]  }
 0x174   : > { %1328 = vmatpush1.bf16.msra.mxu0 %v2640_v37  ;;  %1410 = vmatpush1.bf16.msra.mxu1 %v2643_v38  ;;  %v2707_v37 = vld [vmem:[#allocation8 + $0xc0] sm:$0xff]   ;;  %v2736_v2 = vld [vmem:[#allocation8 + $0x38] sm:$0xff]  }
 0x175   : > { %1329 = vmatprep.subr.bf16.mxu0 %v2648_v40  ;;  %1411 = vmatprep.subr.bf16.mxu1 %v2651_v41  ;;  %v2708_v38 = vld [vmem:[#allocation8] sm:$0xff]   ;;  %v2710_v40 = vld [vmem:[#allocation8 + $0x48] sm:$0xff]  }
 0x176   : > { %v2709_v39 = vld [vmem:[#allocation8 + $0x80] sm:$0xff]   ;;  %v2711_v41 = vld [vmem:[#allocation8 + $0xc8] sm:$0xff]  }
 0x178   : > { %1330 = vmatpush1.bf16.msra.mxu0 %v2646_v43  ;;  %1412 = vmatpush1.bf16.msra.mxu1 %v2649_v44  ;;  %v2713_v43 = vld [vmem:[#allocation8 + $0x88] sm:$0xff]   ;;  %v2714_v44 = vld [vmem:[#allocation8 + $0x50] sm:$0xff]  }
 0x179   : > { %1331 = vmatprep.subr.bf16.mxu0 %v2654_v45  ;;  %1413 = vmatprep.subr.bf16.mxu1 %v2657_v46  ;;  %v2715_v45 = vld [vmem:[#allocation8 + $0xd0] sm:$0xff]  }
 0x17a   : > { %v2716_v46 = vld [vmem:[#allocation8 + $0x10] sm:$0xff]  }
 0x17c   : > { %1332 = vmatpush1.bf16.msra.mxu0 %v2652_v47  ;;  %1414 = vmatpush1.bf16.msra.mxu1 %v2655_v48  ;;  %v2717_v47 = vld [vmem:[#allocation8 + $0x90] sm:$0xff]   ;;  %v2718_v48 = vld [vmem:[#allocation8 + $0x58] sm:$0xff]  }
 0x17d   : > { %1333 = vmatprep.subr.bf16.mxu0 %v2660_v49  ;;  %1415 = vmatprep.subr.bf16.mxu1 %v2663_v50  ;;  %v2719_v49 = vld [vmem:[#allocation8 + $0xd8] sm:$0xff]  }
 0x17e   : > { %v2721_v50 = vld [vmem:[#allocation8 + $0x98] sm:$0xff]  }
 0x180   : > { %1334 = vmatpush1.bf16.msra.mxu0 %v2658_v0  ;;  %1416 = vmatpush1.bf16.msra.mxu1 %v2661_v52  ;;  %v2722_v0 = vld [vmem:[#allocation8 + $0x60] sm:$0xff]  }
 0x181   : > { %1335 = vmatprep.subr.bf16.mxu0 %v2666_v53  ;;  %1417 = vmatprep.subr.bf16.mxu1 %v2669_v54  ;;  %v2723_v52 = vld [vmem:[#allocation8 + $0xe0] sm:$0xff]  }
 0x182   : > { %v2724_v53 = vld [vmem:[#allocation8 + $0x20] sm:$0xff]  }
 0x183   : > { %v2725_v54 = vld [vmem:[#allocation8 + $0xa0] sm:$0xff]  }
 0x184   : > { %1336 = vmatpush1.bf16.msra.mxu0 %v2664_v56  ;;  %1418 = vmatpush1.bf16.msra.mxu1 %v2667_v57  ;;  %v2727_v56 = vld [vmem:[#allocation8 + $0xe8] sm:$0xff]  }
 0x185   : > { %1337 = vmatprep.subr.bf16.mxu0 %v2672_v58  ;;  %1419 = vmatprep.subr.bf16.mxu1 %v2675_v59  ;;  %v2728_v57 = vld [vmem:[#allocation8 + $0x28] sm:$0xff]   ;;  %v2730_v59 = vld [vmem:[#allocation8 + $0x70] sm:$0xff]  }
 0x186   : > { %v2729_v58 = vld [vmem:[#allocation8 + $0xa8] sm:$0xff]  }
 0x188   : > { %1338 = vmatpush1.bf16.msra.mxu0 %v2670_v61  ;;  %1420 = vmatpush1.bf16.msra.mxu1 %v2673_v62  ;;  %v2732_v61 = vld [vmem:[#allocation8 + $0x30] sm:$0xff]  }
 0x189   : > { %1339 = vmatprep.subr.bf16.mxu0 %v2678_v63  ;;  %1421 = vmatprep.subr.bf16.mxu1 %v2681_v1  ;;  %v2733_v62 = vld [vmem:[#allocation8 + $0xb0] sm:$0xff]   ;;  %v2734_v63 = vld [vmem:[#allocation8 + $0x78] sm:$0xff]  }
 0x18a   : > { %v2735_v1 = vld [vmem:[#allocation8 + $0xf8] sm:$0xff]  }
 0x18c   : > { %1340 = vmatpush1.bf16.msra.mxu0 %v2676_v3  ;;  %1422 = vmatpush1.bf16.msra.mxu1 %v2679_v4  ;;  %v2737_v3 = vld [vmem:[#allocation8 + $0xb8] sm:$0xff]   ;;  %v633_v4 = vld [vmem:[%s3329_s4] sm:$0x1f] }
 0x18d   : > { %2300 = vmatprep.subr.bf16.mxu0 %v2682_v5  ;;  %2392 = vmatprep.subr.bf16.mxu1 %v2953_v10  ;;  %v649_v5 = vsub.s32 3, %v3209_v15 }
 0x18f   : > { %1358 = vmatmul.mubr.bf16.vlgmr.msra.gmra.mrb[0].mxu0 %v3233_v6  ;;  %1440 = vmatmul.mubr.bf16.vlgmr.msra.gmra.mrb[8].mxu1 %v3233_v6 }
 0x190   : > { %2301 = vmatpush3.bf16.msra.mxu0 %v2683_v7  ;;  %1480 = vmatprep.mubr.bf16.mxu0 %v3220_v29  ;;  %v2700_v29 = vld [vmem:[#allocation7 + $0x240] ss:$20 sps:$4 sm:$0xff]   ;;  %v646_v7 = vrot.slane %v633_v4, %v361_v51 }
 0x191   : > { %2393 = vmatpush3.bf16.msra.mxu1 %v2684_v8  ;;  %2302 = vmatprep.subr.bf16.mxu0 %v2685_v9  ;;  %v642_v8 = vrot.slane %v633_v4, %v357_v18  ;;  %v650_v9 = vrot.slane %v633_v4, %v649_v5  ;;  %v2738_v18 = vld [vmem:[#allocation8 + $0x100] sm:$0xff]  }
 0x192   : > { %2394 = vmatprep.subr.bf16.mxu1 %v2953_v10  ;;  %2408 = vmatprep.mubr.msk.bf16.mxu1 %vm2954_vm1, %v2953_v10 }
 0x194   : > { %2303 = vmatpush3.bf16.msra.mxu0 %v2686_v11 }
 0x195   : > { %2395 = vmatpush3.bf16.msra.mxu1 %v2687_v12  ;;  %2304 = vmatprep.subr.bf16.mxu0 %v2688_v13 }
 0x196   : > { %2396 = vmatprep.subr.bf16.mxu1 %v2953_v10 }
 0x198   : > { %2305 = vmatpush3.bf16.msra.mxu0 %v2689_v17 }
 0x199   : > { %2397 = vmatpush3.bf16.msra.mxu1 %v2690_v19  ;;  %2306 = vmatprep.subr.bf16.mxu0 %v2691_v20 }
 0x19a   : > { %2398 = vmatprep.subr.bf16.mxu1 %v2953_v10 }
 0x19c   : > { %2307 = vmatpush3.bf16.msra.mxu0 %v2692_v21 }
 0x19d   : > { %2399 = vmatpush3.bf16.msra.mxu1 %v2693_v22  ;;  %2308 = vmatprep.subr.bf16.mxu0 %v2694_v23 }
 0x19e   : > { %2400 = vmatprep.subr.bf16.mxu1 %v2953_v10 }
 0x1a0   : > { %2309 = vmatpush3.bf16.msra.mxu0 %v2695_v24 }
 0x1a1   : > { %2401 = vmatpush3.bf16.msra.mxu1 %v2696_v25  ;;  %2310 = vmatprep.subr.bf16.mxu0 %v2697_v26 }
 0x1a2   : > { %2402 = vmatprep.subr.bf16.mxu1 %v2953_v10 }
 0x1a4   : > { %2311 = vmatpush3.bf16.msra.mxu0 %v2698_v27 }
 0x1a5   : > { %2403 = vmatpush3.bf16.msra.mxu1 %v2699_v28  ;;  %2312 = vmatprep.subr.bf16.mxu0 %v2700_v29 }
 0x1a6   : > { %2404 = vmatprep.subr.bf16.mxu1 %v2953_v10 }
 0x1a8   : > { %2313 = vmatpush3.bf16.msra.mxu0 %v2701_v30 }
 0x1a9   : > { %2405 = vmatpush3.bf16.msra.mxu1 %v2702_v31  ;;  %2314 = vmatprep.subr.bf16.mxu0 %v2703_v33 }
 0x1aa   : > { %2406 = vmatprep.subr.bf16.mxu1 %v2953_v10 }
 0x1ac   : > { %2315 = vmatpush3.bf16.msra.mxu0 %v2704_v34  ;;  %v2739_v34 = vld [vmem:[#allocation8 + $0x108] sm:$0xff]  }
 0x1ad   : > { %2407 = vmatpush3.bf16.msra.mxu1 %v2705_v35  ;;  %2331 = vmatprep.subr.bf16.mxu0 %v2706_v36  ;;  %v2740_v35 = vld [vmem:[#allocation8 + $0x110] sm:$0xff]   ;;  %v2741_v36 = vld [vmem:[#allocation8 + $0x118] sm:$0xff]  }
 0x1ae   : > { %2353 = vmatprep.subr.bf16.mxu1 %v2707_v37  ;;  %v2742_v37 = vld [vmem:[#allocation8 + $0x120] sm:$0xff]  }
 0x1af   : > { %1481 = vmatmul.mubr.bf16.vlgmr.msra.gmra.mrb[4].mxu0 %v3222_v32  ;;  %v2720_v32 = vld [vmem:[#allocation8 + $0x18] sm:$0xff]  }
 0x1b0   : > { %2409 = vmatmul.mubr.bf16.vlgmr.msra.gmra.mrb[12].mxu1 %v3233_v6  ;;  %2332 = vmatpush3.bf16.msra.mxu0 %v2708_v38  ;;  %v638_v6 = vrot.slane %v633_v4, %v353_v16  ;;  %v2743_v38 = vld [vmem:[#allocation8 + $0x128] sm:$0xff]  }
 0x1b1   : > { %2354 = vmatpush3.bf16.msra.mxu1 %v2709_v39  ;;  %2333 = vmatprep.subr.bf16.mxu0 %v2710_v40  ;;  %v653_v39 = vsub.s32 4, %v3209_v15  ;;  %v2744_v40 = vld [vmem:[#allocation8 + $0x130] sm:$0xff]  }
 0x1b2   : > { %2355 = vmatprep.subr.bf16.mxu1 %v2711_v41 }
 0x1b4   : > { %2334 = vmatpush3.bf16.msra.mxu0 %v2712_v42  ;;  %v654_v42 = vrot.slane %v633_v4, %v653_v39 }
 0x1b5   : > { %2356 = vmatpush3.bf16.msra.mxu1 %v2713_v43  ;;  %2335 = vmatprep.subr.bf16.mxu0 %v2714_v44 }
 0x1b6   : > { %2357 = vmatprep.subr.bf16.mxu1 %v2715_v45 }
 0x1b8   : > { %2336 = vmatpush3.bf16.msra.mxu0 %v2716_v46 }
 0x1b9   : > { %2358 = vmatpush3.bf16.msra.mxu1 %v2717_v47  ;;  %2337 = vmatprep.subr.bf16.mxu0 %v2718_v48  ;;  %v2745_v48 = vld [vmem:[#allocation8 + $0x138] sm:$0xff]  }
 0x1ba   : > { %2359 = vmatprep.subr.bf16.mxu1 %v2719_v49 }
 0x1bc   : > { %2338 = vmatpush3.bf16.msra.mxu0 %v2720_v32 }
 0x1bd   : > { %2360 = vmatpush3.bf16.msra.mxu1 %v2721_v50  ;;  %2339 = vmatprep.subr.bf16.mxu0 %v2722_v0 }
 0x1be   : > { %2361 = vmatprep.subr.bf16.mxu1 %v2723_v52 }
 0x1c0   : > { %2340 = vmatpush3.bf16.msra.mxu0 %v2724_v53 }
 0x1c1   : > { %2362 = vmatpush3.bf16.msra.mxu1 %v2725_v54  ;;  %2341 = vmatprep.subr.bf16.mxu0 %v2726_v55 }
 0x1c2   : > { %2363 = vmatprep.subr.bf16.mxu1 %v2727_v56  ;;  %v2252_v56 = vld [vmem:[%s3331_s6] ss:$0 sm:$0xff] }
 0x1c4   : > { %2342 = vmatpush3.bf16.msra.mxu0 %v2728_v57 }
 0x1c5   : > { %2364 = vmatpush3.bf16.msra.mxu1 %v2729_v58  ;;  %2343 = vmatprep.subr.bf16.mxu0 %v2730_v59 }
 0x1c6   : > { %2365 = vmatprep.subr.bf16.mxu1 %v2731_v60 }
 0x1c8   : > { %2344 = vmatpush3.bf16.msra.mxu0 %v2732_v61 }
 0x1c9   : > { %2366 = vmatpush3.bf16.msra.mxu1 %v2733_v62  ;;  %2345 = vmatprep.subr.bf16.mxu0 %v2734_v63 }
 0x1ca   : > { %2367 = vmatprep.subr.bf16.mxu1 %v2735_v1 }
 0x1cc   : > { %2346 = vmatpush3.bf16.msra.mxu0 %v2736_v2 }
 0x1cd   : > { %2368 = vmatpush3.bf16.msra.mxu1 %v2737_v3  ;;  %2412 = vmatprep.subr.bf16.mxu0 %v2953_v10 }
 0x262   : > { %v1359_v11 = vpop.f32.mrb[0].mxu0  ;;  %v1441_v12 = vpop.f32.mrb[8].mxu1 }
 0x263   : > { %v2432_v13 = vadd.f32 %v1359_v11, %v638_v6  ;;  %v2434_v17 = vadd.f32 %v1441_v12, %v646_v7  ;;  %v1361_v19 = vpop.f32.mrb[1].mxu0  ;;  %v1443_v20 = vpop.f32.mrb[9].mxu1 }
 0x264   : > { %v2433_v21 = vadd.f32 %v1361_v19, %v642_v8  ;;  %v2435_v22 = vadd.f32 %v1443_v20, %v650_v9  ;;  %v1363_v23 = vpop.f32.mrb[2].mxu0  ;;  %v1445_v24 = vpop.f32.mrb[10].mxu1 }
 0x265   : > { %v1528_v25 = vmax.f32 %v2432_v13, 0.0  ;;  %v1530_v26 = vmax.f32 %v2434_v17, 0.0  ;;  %v1364_v16 = vpop.f32.mrb[3].mxu0  ;;  %v1446_v27 = vpop.f32.mrb[11].mxu1  ;;  %v1986_v13 = vand.u32 127, %v351_v14 }
 0x266   : > { %v1529_v28 = vmax.f32 %v2433_v21, 0.0  ;;  %v1531_v51 = vmax.f32 %v2435_v22, 0.0 }
 0x267   : > { %v1533_v31 = vpack.c.bf16 %v1528_v25, %v1528_v25  ;;  %v1535_v33 = vpack.c.bf16 %v1530_v26, %v1530_v26  ;;  %vm1993_vm2 = vcmp.eq.s32.totalorder %v1986_v13, 0 }
 0x268   : > { %v1534_v29 = vpack.c.bf16 %v1529_v28, %v1529_v28  ;;  %v1536_v30 = vpack.c.bf16 %v1531_v51, %v1531_v51 }
 0x26a   : > { %1897 = vmatprep.mubr.bf16.mxu0 %v1534_v29  ;;  %1937 = vmatprep.mubr.bf16.mxu1 %v1536_v30 }
 0x26b   : > { %1898 = vmatmul.mubr.bf16.vlgmr.msra.gmra.mrb[8].mxu0 %v1533_v31  ;;  %1938 = vmatmul.mubr.bf16.vlgmr.msra.gmra.mrb[16].mxu1 %v1535_v33 }
 0x26c   : > { %2413 = vmatpush3.bf16.msra.mxu0 %v2738_v18  ;;  %2428 = vmatprep.mubr.msk.bf16.mxu0 %vm2954_vm1, %v2953_v10 }
 0x26d   : > { %2414 = vmatprep.subr.bf16.mxu0 %v2953_v10 }
 0x270   : > { %2415 = vmatpush3.bf16.msra.mxu0 %v2739_v34 }
 0x271   : > { %2416 = vmatprep.subr.bf16.mxu0 %v2953_v10 }
 0x274   : > { %2417 = vmatpush3.bf16.msra.mxu0 %v2740_v35 }
 0x275   : > { %2418 = vmatprep.subr.bf16.mxu0 %v2953_v10 }
 0x278   : > { %2419 = vmatpush3.bf16.msra.mxu0 %v2741_v36 }
 0x279   : > { %2420 = vmatprep.subr.bf16.mxu0 %v2953_v10 }
 0x27c   : > { %2421 = vmatpush3.bf16.msra.mxu0 %v2742_v37 }
 0x27d   : > { %2422 = vmatprep.subr.bf16.mxu0 %v2953_v10 }
 0x280   : > { %2423 = vmatpush3.bf16.msra.mxu0 %v2743_v38 }
 0x281   : > { %2424 = vmatprep.subr.bf16.mxu0 %v2953_v10 }
 0x282   : > { %v2316_v41 = vpop.f32.mrb[4].mxu0 }
 0x283   : > { %v1522_v43 = vpop.f32.mrb[12].mxu1  ;;  %v2317_v44 = vpop.f32.mrb[5].mxu0 }
 0x284   : > { %v2318_v45 = vadd.f32 %v2317_v44, %v2316_v41  ;;  %v2410_v46 = vpop.f32.mrb[13].mxu1  ;;  %v2319_v47 = vpop.f32.mrb[6].mxu0  ;;  %2425 = vmatpush3.bf16.msra.mxu0 %v2744_v40 }
 0x285   : > { %v1525_v49 = vpop.f32.mrb[14].mxu1  ;;  %v2320_v32 = vpop.f32.mrb[7].mxu0  ;;  %2426 = vmatprep.subr.bf16.mxu0 %v2953_v10 }
 0x286   : > { %v1483_v50 = vadd.f32 %v2318_v45, %v654_v42  ;;  %v2411_v0 = vpop.f32.mrb[15].mxu1 }
 0x288   : > { %v1523_v15 = vadd.f32 %v1522_v43, %v1483_v50  ;;  %2427 = vmatpush3.bf16.msra.mxu0 %v2745_v48 }
 0x28a   : > { %v1532_v52 = vmax.f32 %v1523_v15, 0.0 }
 0x28c   : > { %v1537_v53 = vpack.c.bf16 %v1532_v52, %v1532_v52 }
 0x28e   : > { %2429 = vmatmul.mubr.bf16.vlgmr.msra.gmra.mrb[12].mxu0 %v1537_v53 }
 0x33e   : > { %v2347_v54 = vpop.f32.mrb[8].mxu0  ;;  %v2369_v55 = vpop.f32.mrb[16].mxu1 }
 0x33f   : > { %v2348_v57 = vpop.f32.mrb[9].mxu0  ;;  %v2370_v58 = vpop.f32.mrb[17].mxu1 }
 0x340   : > { %v2349_v59 = vadd.f32 %v2348_v57, %v2347_v54  ;;  %v2371_v60 = vadd.f32 %v2370_v58, %v2369_v55  ;;  %v2350_v61 = vpop.f32.mrb[10].mxu0  ;;  %v2372_v62 = vpop.f32.mrb[18].mxu1 }
 0x341   : > { %v2351_v10 = vpop.f32.mrb[11].mxu0  ;;  %v2373_v63 = vpop.f32.mrb[19].mxu1 }
 0x342   : > { %v1900_v1 = vadd.f32 %v2349_v59, %v2252_v56 }
 0x344   : > { %v1940_v2 = vadd.f32 %v2371_v60, %v1900_v1 }
 0x361   : > { %v1979_v3 = vpop.f32.mrb[12].mxu0 }
 0x362   : > { %v1980_v4 = vadd.f32 %v1979_v3, %v1940_v2  ;;  %v2430_v5 = vpop.f32.mrb[13].mxu0 }
 0x363   : > { %v1982_v6 = vpop.f32.mrb[14].mxu0 }
 0x364   : > { %v1987_v7 = vsub.f32 0.0, %v1980_v4  ;;  %v2431_v8 = vpop.f32.mrb[15].mxu0 }
 0x366   : > { %v1988_v9 = vmul.f32 1.442695, %v1987_v7 }
 0x368   : > { %2746 = vpow2.f32 %v1988_v9 }
 0x369   : > { %2748 = vtanh.f32 %v1980_v4 }
 0x372   : > { %v2747_v11 = vpop.eup %2746 }
 0x373   : > { %v1990_v12 = vadd.f32 1.0, %v2747_v11  ;;  %v2749_v17 = vpop.eup %2748 }
 0x375   : > { %2750 = vrcp.f32 %v1990_v12 }
 0x37f   : > { %v2751_v19 = vpop.eup %2750 }
 0x380   : > { %v1995_v20 = vsel %vm1993_vm2, %v2749_v17, %v2751_v19 }
 0x381   : > { %1996 = vst [vmem:[%s337_s12] sm:$0xff] %v1995_v20 }
 0x382   : > { %2879 = shalt.err (!%p2876_p4)
}
 0x383   : > { %s2880_s10 = scalar_lea.hbm %s3281_s21, 128  ;;  %s2884_s1 = scalar_lea.hbm %s3332_s7, 256 }
 0x384   : > { %p2881_p0 = scmp.ne.s32.totalorder %s3281_s21, %s2880_s10  ;;  %p2885_p8 = scmp.lt.u32.totalorder %s3281_s21, %s3332_s7 }
 0x385   : > { %p2886_p13 = scmp.lt.u32.totalorder %s2884_s1, %s2880_s10  ;;  %p2888_p10 = scmp.lt.u32.totalorder %s2880_s10, %s3281_s21 }
 0x386   : > { %p2882_p9 = pnand %p2881_p0, %p3138_p5 }
 0x387   : > { %p2887_p6 = por %p2886_p13, %p2885_p8 }
 0x388   : > { %p2883_p11 = pneg %p2882_p9 }
 0x389   : > { %p2889_p3 = por %p2888_p10, %p2887_p6 }
 0x38b   : > { %p2890_p7 = pnand %p2889_p3, %p2883_p11 }
 0x38d   : > { %2893 = shalt.err (!%p2890_p7)
}
 0x38e   : > { %2458 = dma.vmem_to_hbm [thread:$0]  (%p3138_p5), %s3283_s23, 128, %s3281_s21, %s1998_s17  }
 0x38f PF: > { %s2023_s12 = sand.u32 1, %s2928_s24   ;;  %p3352_p12 = scmp.ne.s32.totalorder %s3338_s8, 0 }
 0x390   : > { %p3353_p2 = scmp.ge.s32.totalorder %s2940_s27, 2  ;;  %s2024_s14 = scalar_lea.sflag [#allocation4], %s2023_s12 }
 0x392   : > { %p2475_p1 = pnand %p3353_p2, %p3352_p12 }
 0x394   : > { %2923 = dma.done.wait (!%p2475_p1), %s2024_s14, 128  }
 0x395   : > { %2925 = vsyncadd (!%p2475_p1), %s2024_s14, 4294967168  ;;  %p22_p4 = scmp.ge.s32.totalorder %s3124_s13, 4   ;;  %s3354_s24 = smov %s2932_s25 }
 0x396   : > { %s3355_s25 = smov %s2936_s26  ;;  %s3356_s26 = smov %s3134_s18 }
 0x397   : > { %s3357_s27 = smov %s3124_s13  ;;  %24 = sbr.rel (!%p22_p4) target bundleno = 9 (0x9), region = 105 }
 0x39e   :  { %2029 = vsyncpa [#allocation3], 1 }
 0x39f   :  { %2031 = vsyncpa [#allocation3 + $0x1], 1 }
 0x3a0   :  { %2032 = vsyncpa [#allocation6], 1 }
 0x3a1   :  { %2033 = vsyncpa [#allocation9], 1 }
 0x3a2   :  { %2034 = vsyncpa [#allocation4], 1 }
 0x3a3   :  { %2036 = vsyncpa [#allocation4 + $0x1], 1 }

</bundles_post_ra>
